<compile_context>
chip_gen: v5e
topology: v5e:2x2
jax: 0.10.0
libtpu: 0.0.40
codegen_flags: <defaults>
</compile_context>

<pallas_src>
import jax
import jax.numpy as jnp
from jax.experimental import pallas as pl
from jax.experimental.pallas import tpu as pltpu


def _round_up(x, m):
    return (x + m - 1) // m * m


def _plda_score_kernel(e_ref, t_ref, eq_ref, tq_ref, o_ref):
    # One lane-dense (tm, tn) tile of the pairwise LLR matrix:
    #   o = (E_w @ T^T) + eq_col + tq_row
    # where E_w has the per-dim cross weights b folded in, eq_col[i] =
    # sum_d a_d e[i,d]^2 and tq_row[j] = sum_d a_d t[j,d]^2 + sum_d c_d
    # (zeros when by_the_book=False).  Contraction on the padded feature dim.
    cross = jax.lax.dot_general(
        e_ref[...], t_ref[...], (((1,), (1,)), ((), ())),
        preferred_element_type=jnp.float32)
    o_ref[...] = (cross + eq_ref[...] + tq_ref[...]).astype(o_ref.dtype)


def score_diag_plda(enroll, test, w_real, *, by_the_book=True, len_norm=False,
                    tm=256, tn=256, matmul_dtype=jnp.float32):
    """Pallas wrapper: scores = ScoreDiagPLDA(w)(enroll, test)."""
    ne, d = enroll.shape
    nt, d2 = test.shape
    assert d == d2

    e = enroll.astype(jnp.float32)
    t = test.astype(jnp.float32)
    if len_norm:
        e = e * jax.lax.rsqrt(jnp.sum(e * e, axis=-1, keepdims=True))
        t = t * jax.lax.rsqrt(jnp.sum(t * t, axis=-1, keepdims=True))

    # real2pos == softplus (numerically stable for large w_real).
    w = jax.nn.softplus(w_real.astype(jnp.float32))
    # Algebraic forms of the book coefficients (avoid 1/w & det underflow).
    b = w * w / (2.0 * w + 1.0)                              # cross weights
    a = -0.5 * w ** 3 / ((w + 1.0) * (2.0 * w + 1.0))        # quadratic weights
    c = 0.5 * (2.0 * jnp.log1p(w) - jnp.log1p(2.0 * w))      # per-dim constant

    e_w = e * b
    if by_the_book:
        eq = jnp.sum(a * e * e, axis=-1, keepdims=True)               # (Ne, 1)
        tq = jnp.sum(a * t * t, axis=-1, keepdims=True).T + jnp.sum(c)  # (1, Nt)
    else:
        eq = jnp.zeros((ne, 1), jnp.float32)
        tq = jnp.zeros((1, nt), jnp.float32)

    # Tile sizes: tm multiple of 8, tn multiple of 128 (lane-dense output),
    # clamped so tiny problems don't over-pad.
    tm_eff = min(tm, _round_up(ne, 8))
    tn_eff = min(tn, _round_up(nt, 128))
    ne_p = _round_up(ne, tm_eff)
    nt_p = _round_up(nt, tn_eff)
    dp = _round_up(d, 128)

    e_w = jnp.pad(e_w, ((0, ne_p - ne), (0, dp - d))).astype(matmul_dtype)
    t_m = jnp.pad(t, ((0, nt_p - nt), (0, dp - d))).astype(matmul_dtype)
    eq = jnp.pad(eq, ((0, ne_p - ne), (0, 0)))
    tq = jnp.pad(tq, ((0, 0), (0, nt_p - nt)))

    grid = (ne_p // tm_eff, nt_p // tn_eff)   # enroll outer, test inner:
    # enroll block index is constant across the inner axis -> no re-DMA.
    out = pl.pallas_call(
        _plda_score_kernel,
        out_shape=jax.ShapeDtypeStruct((ne_p, nt_p), jnp.float32),
        grid=grid,
        in_specs=[
            pl.BlockSpec((tm_eff, dp), lambda i, j: (i, 0)),   # enroll*b tile
            pl.BlockSpec((tn_eff, dp), lambda i, j: (j, 0)),   # test tile
            pl.BlockSpec((tm_eff, 1), lambda i, j: (i, 0)),    # eq column
            pl.BlockSpec((1, tn_eff), lambda i, j: (0, j)),    # tq row (+sum c)
        ],
        out_specs=pl.BlockSpec((tm_eff, tn_eff), lambda i, j: (i, j)),
        compiler_params=pltpu.CompilerParams(
            dimension_semantics=("parallel", "parallel")),
    )(e_w, t_m, eq, tq)
    return out[:ne, :nt]


def score_diag_plda_ref(enroll, test, w, *, by_the_book=True, len_norm=False):
    """Pure-JAX reference of the same diag-PLDA LLR (for verification)."""
    e = enroll.astype(jnp.float32)
    t = test.astype(jnp.float32)
    if len_norm:
        e = e / jnp.linalg.norm(e, axis=-1, keepdims=True)
        t = t / jnp.linalg.norm(t, axis=-1, keepdims=True)
    v = 1.0 / w
    one_pv = 1.0 + v
    det = v * v + 2.0 * v
    b = 1.0 / det
    a = -0.5 / (one_pv * det)
    c = 0.5 * (2.0 * jnp.log(one_pv) - jnp.log(det))
    cross = (e * b) @ t.T
    if not by_the_book:
        return cross
    eq = jnp.sum(e * e * a, axis=-1, keepdims=True)
    tq = jnp.sum(t * t * a, axis=-1, keepdims=True)
    return cross + eq + tq.T + jnp.sum(c)


if __name__ == "__main__":
    key = jax.random.PRNGKey(0)
    ke, kt, kw = jax.random.split(key, 3)

    # Non-tile-aligned shapes to exercise the padding/slicing path.
    Ne, Nt, D = 24, 40, 96
    enroll = jax.random.normal(ke, (Ne, D), jnp.float32)   # enrollment centroids
    test = jax.random.normal(kt, (Nt, D), jnp.float32)     # test embeddings

    # Positive within-class precision w; the module stores w_ = pos2real(w)
    # (softplus inverse) and applies real2pos (softplus) in forward.
    w = 0.5 + jax.random.uniform(kw, (D,), jnp.float32)
    w_real = jnp.log(jnp.expm1(w))                         # pos2real(w)

    # 1) by-the-book, f32 matmul.
    scores = score_diag_plda(enroll, test, w_real, by_the_book=True,
                             len_norm=False)
    scores = jax.block_until_ready(scores)
    ref = score_diag_plda_ref(enroll, test, w, by_the_book=True, len_norm=False)
    assert scores.shape == (Ne, Nt)
    assert jnp.allclose(scores, ref, atol=1e-3, rtol=1e-3), float(
        jnp.max(jnp.abs(scores - ref)))

    # 2) simplified scoring + length normalization.
    scores2 = jax.block_until_ready(
        score_diag_plda(enroll, test, w_real, by_the_book=False, len_norm=True))
    ref2 = score_diag_plda_ref(enroll, test, w, by_the_book=False, len_norm=True)
    assert jnp.allclose(scores2, ref2, atol=1e-3, rtol=1e-3), float(
        jnp.max(jnp.abs(scores2 - ref2)))

    # 3) bf16 MXU operands (full-rate MXU on v6e/v7x), f32 accumulation.
    scores3 = jax.block_until_ready(
        score_diag_plda(enroll, test, w_real, by_the_book=True, len_norm=False,
                        matmul_dtype=jnp.bfloat16))
    assert jnp.allclose(scores3, ref, atol=1e-1, rtol=5e-2), float(
        jnp.max(jnp.abs(scores3 - ref)))

    print("KERNEL_OK")
</pallas_src>

<mosaic_0001>
module attributes {stable_mosaic.version = 11 : i64} {
  func.func @_plda_score_kernel(%arg0: i32, %arg1: i32, %arg2: memref<24x128xf32, #tpu.memory_space<vmem>>, %arg3: memref<128x128xf32, #tpu.memory_space<vmem>>, %arg4: memref<24x1xf32, #tpu.memory_space<vmem>>, %arg5: memref<1x128xf32, #tpu.memory_space<vmem>>, %arg6: memref<24x128xf32, #tpu.memory_space<vmem>>) attributes {dimension_semantics = [#tpu.dimension_semantics<parallel>, #tpu.dimension_semantics<parallel>], iteration_bounds = array<i64: 1, 1>, scalar_prefetch = 0 : i64, scratch_operands = 0 : i64, tpu.core_type = #tpu.core_type<tc>, window_params = [{transform_indices = @transform_0, window_bounds = array<i64: 24, 128>}, {transform_indices = @transform_1, window_bounds = array<i64: 128, 128>}, {transform_indices = @transform_2, window_bounds = array<i64: 24, 1>}, {transform_indices = @transform_3, window_bounds = array<i64: 1, 128>}, {transform_indices = @transform_4, window_bounds = array<i64: 24, 128>}]} {
    %c0 = arith.constant 0 : index
    %c0_0 = arith.constant 0 : index
    %0 = vector.load %arg2[%c0, %c0_0] : memref<24x128xf32, #tpu.memory_space<vmem>>, vector<24x128xf32>
    %c0_1 = arith.constant 0 : index
    %c0_2 = arith.constant 0 : index
    %1 = vector.load %arg3[%c0_1, %c0_2] : memref<128x128xf32, #tpu.memory_space<vmem>>, vector<128x128xf32>
    %cst = arith.constant dense<0.000000e+00> : vector<24x128xf32>
    %2 = tpu.matmul %0, %1, %cst {dimension_numbers = #tpu.dot_dimension_numbers<[1], [1], [0], [0], [0, 0, 1, 0], [], []>} : vector<24x128xf32>, vector<128x128xf32>, vector<24x128xf32> -> vector<24x128xf32>
    %c0_3 = arith.constant 0 : index
    %c0_4 = arith.constant 0 : index
    %3 = vector.load %arg4[%c0_3, %c0_4] : memref<24x1xf32, #tpu.memory_space<vmem>>, vector<24x1xf32>
    %4 = vector.broadcast %3 : vector<24x1xf32> to vector<24x128xf32>
    %5 = arith.addf %2, %4 : vector<24x128xf32>
    %c0_5 = arith.constant 0 : index
    %c0_6 = arith.constant 0 : index
    %6 = vector.load %arg5[%c0_5, %c0_6] : memref<1x128xf32, #tpu.memory_space<vmem>>, vector<1x128xf32>
    %7 = vector.broadcast %6 : vector<1x128xf32> to vector<24x128xf32>
    %8 = arith.addf %5, %7 : vector<24x128xf32>
    %c0_7 = arith.constant 0 : index
    %c0_8 = arith.constant 0 : index
    %9 = vector.load %arg6[%c0_7, %c0_8] : memref<24x128xf32, #tpu.memory_space<vmem>>, vector<24x128xf32>
    tpu.vector_store %arg6[%c0_7, %c0_8], %8 {strides = array<i32>} : memref<24x128xf32, #tpu.memory_space<vmem>>, vector<24x128xf32>,
    return
  }
  func.func @transform_0(%arg0: i32, %arg1: i32) -> (i32, i32) {
    %c0_i32 = arith.constant 0 : i32
    %c0_i32_0 = arith.constant 0 : i32
    return %arg0, %c0_i32 : i32, i32
  }
  func.func @transform_1(%arg0: i32, %arg1: i32) -> (i32, i32) {
    %c0_i32 = arith.constant 0 : i32
    %c0_i32_0 = arith.constant 0 : i32
    return %arg1, %c0_i32 : i32, i32
  }
  func.func @transform_2(%arg0: i32, %arg1: i32) -> (i32, i32) {
    %c0_i32 = arith.constant 0 : i32
    %c0_i32_0 = arith.constant 0 : i32
    return %arg0, %c0_i32 : i32, i32
  }
  func.func @transform_3(%arg0: i32, %arg1: i32) -> (i32, i32) {
    %c0_i32 = arith.constant 0 : i32
    %c0_i32_0 = arith.constant 0 : i32
    return %c0_i32, %arg1 : i32, i32
  }
  func.func @transform_4(%arg0: i32, %arg1: i32) -> (i32, i32) {
    %c0_i32 = arith.constant 0 : i32
    return %arg0, %arg1 : i32, i32
  }
}

</mosaic_0001>

<bundles_post_ra>
// kernel: tpu_custom_call.1
= control target key start
LH: loop header
LB: loop body
LE: loop exit
PB: predicated region body
PF: predicated region fallthrough
CT: control target
= control target key end

     0   :  { %9 = vsyncpa [#allocation3], 0  ;;  %s281_s0 = inlined_call_operand.vmem [shape: f32[24,128], index: 0, kind: input, shape index: {}]   ;;  %s282_s1 = inlined_call_operand.hbm [shape: f32[128,128], index: 1, kind: input, shape index: {}]   ;;  %s283_s2 = inlined_call_operand.vmem [shape: f32[24,1], index: 2, kind: input, shape index: {}]   ;;  %s284_s3 = inlined_call_operand.vmem [shape: f32[1,128], index: 3, kind: input, shape index: {}]   ;;  %s285_s4 = inlined_call_operand.hbm [shape: f32[24,128], index: 4, kind: output, shape index: {}]  }
   0x1   :  { %10 = vsyncpa [#allocation4], 0  ;;  %s17_s17 = sshll.u32 %s282_s1, 4  ;;  %s218_s18 = smov [#allocation2]   ;;  %s18_s17 = int_to_ptr.hbm [resolvable:$true] %s17_s17 }
   0x2   :  { %s19_s19 = sshll.u32 %s218_s18, 4  ;;  %s219_s20 = smov 128   ;;  %s20_s19 = int_to_ptr.vmem [resolvable:$true] %s19_s19 }
   0x3   :  { %s220_s21 = smov 8  }
   0x4   :  { %25 = dma.hbm_to_vmem [thread:$0]  %s18_s17, 2048, %s20_s19, [#allocation3], %s219_s20, %s219_s20, %s220_s21  }
   0x5   :  { %214 = dma.done.wait [#allocation3], 2048  }
   0x6   :  { %215 = vsyncadd [#allocation3], 4294965248  ;;  %v52_v0 = vld [vmem:[#allocation2 + $0x78] sm:$0xff]  ;;  %v51_v1 = vld [vmem:[#allocation2 + $0x70] sm:$0xff]  ;;  %v221_v9 = vmov 0   ;;  %s113_s11 = sshll.u32 %s285_s4, 4  ;;  %s114_s11 = int_to_ptr.hbm [resolvable:$true] %s113_s11 }
   0x7   :  { %71 = vmatpush.xpose.msra.mxu0 %v52_v0  ;;  %126 = vmatpush.xpose.msra.mxu1 %v52_v0  ;;  %v50_v2 = vld [vmem:[#allocation2 + $0x68] sm:$0xff]  ;;  %v49_v3 = vld [vmem:[#allocation2 + $0x60] sm:$0xff]  ;;  %v48_v4 = vld [vmem:[#allocation2 + $0x58] sm:$0xff] }
   0x8   :  { %127 = vmatpush.xpose.msra.mxu2 %v52_v0  ;;  %v47_v5 = vld [vmem:[#allocation2 + $0x50] sm:$0xff]  ;;  %v46_v6 = vld [vmem:[#allocation2 + $0x48] sm:$0xff]  ;;  %v45_v7 = vld [vmem:[#allocation2 + $0x40] sm:$0xff]  ;;  %163 = vset.pattern.permute.xlu0 %v221_v9 }
   0x9   :  { %v44_v8 = vld [vmem:[#allocation2 + $0x38] sm:$0xff]  ;;  %164 = vset.pattern.permute.xlu1 %v221_v9  ;;  %v53_v10 = vld [vmem:[%s283_s2] sm:$0xff]  ;;  %v55_v11 = vld [vmem:[%s283_s2 + $0x10] sm:$0xff] }
   0xa   :  { %v43_v12 = vld [vmem:[#allocation2 + $0x30] sm:$0xff]  ;;  %58 = vperm.xlu0 %163, %v53_v10   ;;  %68 = vperm.xlu1 %164, %v55_v11   ;;  %v42_v13 = vld [vmem:[#allocation2 + $0x28] sm:$0xff]  ;;  %v41_v15 = vld [vmem:[#allocation2 + $0x20] sm:$0xff] }
   0xb   :  { %72 = vmatpush.xpose.msra.mxu0 %v51_v1  ;;  %128 = vmatpush.xpose.msra.mxu1 %v51_v1  ;;  %v54_v14 = vld [vmem:[%s283_s2 + $0x8] sm:$0xff]  ;;  %v40_v16 = vld [vmem:[#allocation2 + $0x18] sm:$0xff]  ;;  %v39_v17 = vld [vmem:[#allocation2 + $0x10] sm:$0xff] }
   0xc   :  { %129 = vmatpush.xpose.msra.mxu2 %v51_v1  ;;  %v38_v18 = vld [vmem:[#allocation2 + $0x8] sm:$0xff]  ;;  %v37_v19 = vld [vmem:[#allocation2] sm:$0xff]  ;;  %v36_v22 = vld [vmem:[%s281_s0 + $0x10] sm:$0xff] }
   0xd   :  { %v34_v20 = vld [vmem:[%s281_s0] sm:$0xff]  ;;  %v35_v21 = vld [vmem:[%s281_s0 + $0x8] sm:$0xff]  ;;  %s222_s0 = smov [#allocation5]  }
   0xe   :  { %v165_v25 = vld [vmem:[%s284_s3] ss:$0 sm:$0xff]  ;;  %s111_s8 = sshll.u32 %s222_s0, 4  ;;  %s112_s8 = int_to_ptr.vmem [resolvable:$true] %s111_s8 }
   0xf   :  { %73 = vmatpush.xpose.msra.mxu0 %v50_v2  ;;  %130 = vmatpush.xpose.msra.mxu1 %v50_v2 }
  0x10   :  { %131 = vmatpush.xpose.msra.mxu2 %v50_v2 }
  0x12   :  { %63 = vperm.xlu0 %163, %v54_v14  }
  0x13   :  { %74 = vmatpush.xpose.msra.mxu0 %v49_v3  ;;  %132 = vmatpush.xpose.msra.mxu1 %v49_v3 }
  0x14   :  { %133 = vmatpush.xpose.msra.mxu2 %v49_v3 }
  0x17   :  { %75 = vmatpush.xpose.msra.mxu0 %v48_v4  ;;  %134 = vmatpush.xpose.msra.mxu1 %v48_v4 }
  0x18   :  { %135 = vmatpush.xpose.msra.mxu2 %v48_v4 }
  0x1b   :  { %76 = vmatpush.xpose.msra.mxu0 %v47_v5  ;;  %136 = vmatpush.xpose.msra.mxu1 %v47_v5 }
  0x1c   :  { %137 = vmatpush.xpose.msra.mxu2 %v47_v5 }
  0x1f   :  { %77 = vmatpush.xpose.msra.mxu0 %v46_v6  ;;  %138 = vmatpush.xpose.msra.mxu1 %v46_v6 }
  0x20   :  { %139 = vmatpush.xpose.msra.mxu2 %v46_v6 }
  0x23   :  { %78 = vmatpush.xpose.msra.mxu0 %v45_v7  ;;  %140 = vmatpush.xpose.msra.mxu1 %v45_v7 }
  0x24   :  { %141 = vmatpush.xpose.msra.mxu2 %v45_v7 }
  0x27   :  { %79 = vmatpush.xpose.msra.mxu0 %v44_v8  ;;  %142 = vmatpush.xpose.msra.mxu1 %v44_v8 }
  0x28   :  { %143 = vmatpush.xpose.msra.mxu2 %v44_v8 }
  0x2b   :  { %80 = vmatpush.xpose.msra.mxu0 %v43_v12  ;;  %144 = vmatpush.xpose.msra.mxu1 %v43_v12 }
  0x2c   :  { %145 = vmatpush.xpose.msra.mxu2 %v43_v12 }
  0x2f   :  { %81 = vmatpush.xpose.msra.mxu0 %v42_v13  ;;  %146 = vmatpush.xpose.msra.mxu1 %v42_v13 }
  0x30   :  { %147 = vmatpush.xpose.msra.mxu2 %v42_v13 }
  0x33   :  { %82 = vmatpush.xpose.msra.mxu0 %v41_v15  ;;  %148 = vmatpush.xpose.msra.mxu1 %v41_v15 }
  0x34   :  { %149 = vmatpush.xpose.msra.mxu2 %v41_v15 }
  0x37   :  { %83 = vmatpush.xpose.msra.mxu0 %v40_v16  ;;  %150 = vmatpush.xpose.msra.mxu1 %v40_v16 }
  0x38   :  { %151 = vmatpush.xpose.msra.mxu2 %v40_v16 }
  0x3b   :  { %84 = vmatpush.xpose.msra.mxu0 %v39_v17  ;;  %152 = vmatpush.xpose.msra.mxu1 %v39_v17 }
  0x3c   :  { %153 = vmatpush.xpose.msra.mxu2 %v39_v17 }
  0x3f   :  { %85 = vmatpush.xpose.msra.mxu0 %v38_v18  ;;  %154 = vmatpush.xpose.msra.mxu1 %v38_v18 }
  0x40   :  { %155 = vmatpush.xpose.msra.mxu2 %v38_v18 }
  0x43   :  { %86 = vmatpush.xpose.msra.mxu0 %v37_v19  ;;  %156 = vmatpush.xpose.msra.mxu1 %v37_v19 }
  0x44   :  { %157 = vmatpush.xpose.msra.mxu2 %v37_v19 }
  0x46   :  { %87 = vmatmul.f32.vlgmr.msra.gmra.mxu0 %v34_v20  ;;  %90 = vmatmul.f32.vlgmr.msra.gmra.mxu1 %v35_v21 }
  0x47   :  { %93 = vmatmul.f32.vlgmr.msra.gmra.mxu2 %v36_v22 }
  0x7c   :  { %v59_v23 = vpop.permute.xlu0 %58  ;;  %v69_v32 = vpop.permute.xlu1 %68 }
  0x84   :  { %v64_v24 = vpop.permute.xlu0 %63 }
  0xc3   :  { %v88_v26 = vpop.f32.mrf.mxu0  ;;  %v91_v27 = vpop.f32.mrf.mxu1 }
  0xc4   :  { %v89_v28 = vadd.f32 %v88_v26, %v59_v23  ;;  %v92_v29 = vadd.f32 %v91_v27, %v64_v24 }
  0xc6   :  { %v101_v30 = vadd.f32 %v165_v25, %v89_v28  ;;  %v102_v31 = vadd.f32 %v165_v25, %v92_v29 }
  0xc8   :  { %104 = vst [vmem:[#allocation5] sm:$0xff] %v101_v30 }
  0xc9   :  { %105 = vst [vmem:[#allocation5 + $0x8] sm:$0xff] %v102_v31 }
  0xca   :  { %v94_v33 = vpop.f32.mrf.mxu2 }
  0xcb   :  { %v95_v34 = vadd.f32 %v94_v33, %v69_v32 }
  0xcd   :  { %v103_v35 = vadd.f32 %v165_v25, %v95_v34 }
  0xcf   :  { %106 = vst [vmem:[#allocation5 + $0x10] sm:$0xff] %v103_v35 }
  0xd0   :  { %119 = dma.vmem_to_hbm [thread:$0]  %s112_s8, 384, %s114_s11, [#allocation4], %s219_s20, %s219_s20, %s220_s21  }
  0xd1   :  { %216 = dma.done.wait [#allocation4], 384  }
  0xd2   :  { %217 = vsyncadd [#allocation4], 4294966912 }
  0xd3   :  { %124 = vsyncpa [#allocation3], 1 }
  0xd4   :  { %125 = vsyncpa [#allocation4], 1 }

</bundles_post_ra>
